<compile_context>
chip_gen: v7x
topology: tpu7x:2x2x1
jax: 0.10.0
libtpu: 0.0.40
codegen_flags: <defaults>
</compile_context>

<pallas_src>
import functools

import jax
import jax.numpy as jnp
from jax.experimental import pallas as pl
from jax.experimental.pallas import tpu as pltpu

# Small, module-consistent demo shapes.
N_INST = 64        # number of instances in the bag
L = 256            # input feature dim (module default 1024, shrunk for demo)
D = 128            # hidden attention dim (module default 224, shrunk; 128-aligned)
N_CLASSES = 6      # module default n_classes
K_SAMPLE = 8


# ----------------------------------------------------------------------------
# Fused kernel:
#   h      = x @ [Wv|Wu] + [bv|bu]                       (N, 2D)   bf16 MXU
#   gated  = tanh(h[:, :D]) * sigmoid(h[:, D:])          (N, D)    f32
#   s      = Ww_row · gated  (contract over D)           (1, N)    lane-dense
#   A      = softmax(s, axis=-1)                         (1, N)
#   full   = x @ [W_inst(2C) | Wc(C) | 0-pad]            (N, 128)  bf16 MXU
#   inst   = full + b_inst_row                           (N, 128)  (cols 0:2C used)
#   logits = (A @ full)[:, 2C:3C] + bc                   (1, C)    == (A@x)@Wc + bc
#   Y_prob = softmax(logits, axis=-1)                    (1, C)
#   slab   = [A | logits | Y_prob | 0-pad]               (1, 128)  single store
# ----------------------------------------------------------------------------
def gated_attention_fused_kernel(x_ref, wvu_ref, wall_ref, consts_ref,
                                 slab_ref, inst_ref, *, n, c):
    d = wvu_ref.shape[1] // 2
    inst_w = wall_ref.shape[1]

    x = x_ref[...]                                              # (N, L) bf16

    # Packed constants (one DMA): row0 = bv|bu, row1 = Ww row, row2 = bc,
    # row3 = stacked instance biases (zero-padded).
    bvu = consts_ref[0:1, :2 * d]                               # (1, 2D) f32
    ww = consts_ref[1:2, :d]                                    # (1, D)  f32
    bc = consts_ref[2:3, :c]                                    # (1, C)  f32
    b_inst = consts_ref[3:4, :inst_w]                           # (1, 128) f32

    # Fused attention_V | attention_U projection: one bf16 MXU pass, f32 acc.
    h = jnp.dot(x, wvu_ref[...],
                preferred_element_type=jnp.float32) + bvu       # (N, 2D) f32
    gated = jnp.tanh(h[:, :d]) * jax.nn.sigmoid(h[:, d:])       # (N, D)  f32

    # attention_weights projection, lane-dense (1, N), no gated.T materialized.
    # (the scalar bias of attention_weights is dropped: softmax shift-invariant)
    s = jax.lax.dot_general(ww, gated,
                            dimension_numbers=(((1,), (1,)), ((), ())),
                            preferred_element_type=jnp.float32)  # (1, N)

    # softmax over instances (lane axis, max-stabilized, EUP reciprocal)
    s_max = jnp.max(s, axis=-1, keepdims=True)
    p = jnp.exp(s - s_max)
    a = p * pl.reciprocal(jnp.sum(p, axis=-1, keepdims=True), approx=True)

    # Fused per-instance classifiers + bag-classifier projection.
    full = jnp.dot(x, wall_ref[...],
                   preferred_element_type=jnp.float32)          # (N, 128) f32
    inst_ref[...] = full + b_inst                               # inst logits in cols 0:2C

    # bag logits: A @ (x @ Wc) == (A @ x) @ Wc   (tiny f32 matmul, exact path)
    proj = jnp.dot(a, full, preferred_element_type=jnp.float32)  # (1, 128)
    logits = proj[:, 2 * c:3 * c] + bc                           # (1, C)

    l_max = jnp.max(logits, axis=-1, keepdims=True)
    pe = jnp.exp(logits - l_max)
    prob = pe * pl.reciprocal(jnp.sum(pe, axis=-1, keepdims=True), approx=True)

    # One lane-dense merged output slab: [A | logits | Y_prob | zero pad].
    pad = slab_ref.shape[1] - (n + 2 * c)
    pieces = [a, logits, prob]
    if pad > 0:
        pieces.append(jnp.zeros((1, pad), jnp.float32))
    slab_ref[...] = jnp.concatenate(pieces, axis=-1)


def gated_attention_pallas(x_bf, wvu_bf, w_all_bf, consts, n_classes):
    n = x_bf.shape[0]
    c = n_classes
    inst_w = w_all_bf.shape[1]
    slab_w = -(-(n + 2 * c) // 128) * 128

    kernel = functools.partial(gated_attention_fused_kernel, n=n, c=c)
    vmem = pl.BlockSpec(memory_space=pltpu.MemorySpace.VMEM)
    return pl.pallas_call(
        kernel,
        out_shape=(
            jax.ShapeDtypeStruct((1, slab_w), jnp.float32),   # [A|logits|prob|pad]
            jax.ShapeDtypeStruct((n, inst_w), jnp.float32),   # instance logits (padded)
        ),
        in_specs=[
            vmem,    # x        (N, L)    bf16
            vmem,    # Wv|Wu    (L, 2D)   bf16
            vmem,    # W_all    (L, 128)  bf16  (inst classifiers | Wc | pad)
            vmem,    # consts   (4, 2D)   f32   (bv|bu, Ww row, bc, b_inst)
        ],
        out_specs=(vmem, vmem),
    )(x_bf, wvu_bf, w_all_bf, consts)


# ----------------------------------------------------------------------------
# Instance-level evaluation glue (plain JAX).
# TODO(synk): data-dependent top-k + gather + per-class cross-entropy stays in
# plain JAX (tiny: operates on (k, 2C) logit rows already produced in-kernel).
# ----------------------------------------------------------------------------
def _cross_entropy(logits, targets):
    logp = jax.nn.log_softmax(logits, axis=1)
    return -jnp.mean(logp[jnp.arange(targets.shape[0]), targets])


def instance_eval_all(A, inst_logits, label, k, n_classes):
    top_p_ids = jax.lax.top_k(A, k)[1][-1]                  # (k,)
    top_n_ids = jax.lax.top_k(-A, k)[1][-1]                 # (k,)
    lp = inst_logits[top_p_ids]                              # (k, 2C)
    ln = inst_logits[top_n_ids]                              # (k, 2C)

    pos_targets = jnp.concatenate(
        [jnp.ones((k,), jnp.int32), jnp.zeros((k,), jnp.int32)])
    neg_targets = jnp.zeros((k,), jnp.int32)

    total_loss = 0.0
    all_preds, all_targets = [], []
    for i in range(n_classes):
        if i == label:                     # inst_eval (in-class): top_p + top_n
            li = jnp.concatenate([lp[:, 2 * i:2 * i + 2],
                                  ln[:, 2 * i:2 * i + 2]], axis=0)
            ti = pos_targets
        else:                              # inst_eval_out (subtyping=True)
            li = lp[:, 2 * i:2 * i + 2]
            ti = neg_targets
        all_preds.append(jnp.argmax(li, axis=1))
        all_targets.append(ti)
        total_loss = total_loss + _cross_entropy(li, ti)
    total_loss = total_loss / n_classes    # subtyping average
    return total_loss, jnp.concatenate(all_preds), jnp.concatenate(all_targets)


# ----------------------------------------------------------------------------
# Full forward (mirrors GatedAttention.forward with subtyping=True, eval mode)
# ----------------------------------------------------------------------------
def gated_attention_forward(params, x, label=None, instance_eval=True):
    n, l_dim = x.shape
    c = params['Wc'].shape[1]
    d = params['Wv'].shape[1]

    # One-time layout plumbing (folds away under jit).
    wvu = jnp.concatenate([params['Wv'], params['Wu']], axis=1)      # (L, 2D)
    w_stack = jnp.concatenate([w for w, _ in params['inst']], axis=1)  # (L, 2C)
    b_stack = jnp.concatenate([b for _, b in params['inst']], axis=1)  # (1, 2C)

    # Fused per-instance weight: cols [0:2C]=instance classifiers, [2C:3C]=Wc,
    # rest zero-padded to a lane-dense 128-multiple.
    inst_w = -(-(3 * c) // 128) * 128
    w_all = jnp.zeros((l_dim, inst_w), jnp.float32)
    w_all = w_all.at[:, :2 * c].set(w_stack).at[:, 2 * c:3 * c].set(params['Wc'])

    # Packed small constants -> one VMEM operand.
    cw = max(2 * d, inst_w)
    consts = jnp.zeros((4, cw), jnp.float32)
    consts = consts.at[0, :2 * d].set(
        jnp.concatenate([params['bv'], params['bu']], axis=1)[0])
    consts = consts.at[1, :d].set(params['Ww'][:, 0])
    consts = consts.at[2, :c].set(params['bc'][0])
    consts = consts.at[3, :2 * c].set(b_stack[0])
    # (attention_weights bias bw intentionally dropped: softmax shift-invariant)

    slab, inst_pad = gated_attention_pallas(
        x.astype(jnp.bfloat16), wvu.astype(jnp.bfloat16),
        w_all.astype(jnp.bfloat16), consts, c)

    A = slab[:, :n]                                   # (1, N)
    logits = slab[:, n:n + c]                         # (1, C)
    y_prob = slab[:, n + c:n + 2 * c]                 # (1, C)
    inst_logits = inst_pad[:, :2 * c]                 # (N, 2C)

    if instance_eval:
        label = int(label)   # static, mirrors torch's inst_labels[i].item()
        total_inst_loss, inst_preds, inst_targets = instance_eval_all(
            A, inst_logits, label, K_SAMPLE, c)
        results_dict = {
            'instance_loss': total_inst_loss,
            'inst_labels': inst_targets,
            'inst_preds': inst_preds,
        }
    else:
        results_dict = {}

    Y_hat = jnp.argmax(logits, axis=1).reshape(1, 1)  # (1, 1)
    return logits, y_prob, Y_hat, A, results_dict


# ----------------------------------------------------------------------------
# Pure-JAX f32 reference (for tolerance validation of the bf16 MXU path).
# ----------------------------------------------------------------------------
def reference_forward(params, x):
    a_v = jnp.tanh(x @ params['Wv'] + params['bv'])
    a_u = jax.nn.sigmoid(x @ params['Wu'] + params['bu'])
    s = (a_v * a_u) @ params['Ww'] + params['bw']     # (N, 1)
    A = jax.nn.softmax(s.T, axis=1)                   # (1, N)
    M = A @ x
    logits = M @ params['Wc'] + params['bc']
    return A, logits, jax.nn.softmax(logits, axis=1)


# ----------------------------------------------------------------------------
# Deterministic parameter init (torch nn.Linear-style uniform(-1/sqrt(in), ..))
# ----------------------------------------------------------------------------
def init_params(key):
    keys = jax.random.split(key, 8 + 2 * N_CLASSES)

    def linear(kw, kb, fan_in, fan_out):
        bound = 1.0 / float(fan_in) ** 0.5
        W = jax.random.uniform(kw, (fan_in, fan_out), jnp.float32, -bound, bound)
        b = jax.random.uniform(kb, (1, fan_out), jnp.float32, -bound, bound)
        return W, b

    Wv, bv = linear(keys[0], keys[1], L, D)
    Wu, bu = linear(keys[2], keys[3], L, D)
    Ww, bw = linear(keys[4], keys[5], D, 1)
    Wc, bc = linear(keys[6], keys[7], L, N_CLASSES)
    inst = [linear(keys[8 + 2 * i], keys[9 + 2 * i], L, 2)
            for i in range(N_CLASSES)]
    return dict(Wv=Wv, bv=bv, Wu=Wu, bu=bu, Ww=Ww, bw=bw, Wc=Wc, bc=bc, inst=inst)


if __name__ == "__main__":
    key = jax.random.PRNGKey(0)
    k_params, k_x = jax.random.split(key)
    params = init_params(k_params)
    x = jax.random.normal(k_x, (N_INST, L), jnp.float32)
    label = 2  # bag label in [0, N_CLASSES), static Python int

    forward = jax.jit(gated_attention_forward,
                      static_argnames=("label", "instance_eval"))
    logits, y_prob, y_hat, A, results = forward(
        params, x, label=label, instance_eval=True)

    jax.block_until_ready((logits, y_prob, y_hat, A,
                           results['instance_loss'],
                           results['inst_preds'], results['inst_labels']))

    # Shape checks
    assert logits.shape == (1, N_CLASSES)
    assert y_prob.shape == (1, N_CLASSES)
    assert y_hat.shape == (1, 1)
    assert A.shape == (1, N_INST)
    assert results['inst_preds'].shape[0] == K_SAMPLE * (N_CLASSES + 1)
    assert results['inst_labels'].shape[0] == K_SAMPLE * (N_CLASSES + 1)

    # Numerical check against f32 reference (bf16 MXU + approx reciprocal path).
    A_ref, logits_ref, prob_ref = reference_forward(params, x)
    assert jnp.allclose(A, A_ref, atol=5e-3), \
        f"A mismatch: {float(jnp.max(jnp.abs(A - A_ref)))}"
    assert jnp.allclose(logits, logits_ref, atol=2e-2), \
        f"logits mismatch: {float(jnp.max(jnp.abs(logits - logits_ref)))}"
    assert jnp.allclose(y_prob, prob_ref, atol=2e-2), \
        f"Y_prob mismatch: {float(jnp.max(jnp.abs(y_prob - prob_ref)))}"
    assert bool(jnp.isfinite(results['instance_loss']))

    print("KERNEL_OK")
</pallas_src>

<mosaic_0001>
module attributes {stable_mosaic.version = 11 : i64} {
  func.func @gated_attention_fused_kernel(%arg0: memref<64x256xbf16, #tpu.memory_space<vmem>>, %arg1: memref<256x256xbf16, #tpu.memory_space<vmem>>, %arg2: memref<256x128xbf16, #tpu.memory_space<vmem>>, %arg3: memref<4x256xf32, #tpu.memory_space<vmem>>, %arg4: memref<1x128xf32, #tpu.memory_space<vmem>>, %arg5: memref<64x128xf32, #tpu.memory_space<vmem>>) attributes {dimension_semantics = [], scalar_prefetch = 0 : i64, scratch_operands = 0 : i64, tpu.core_type = #tpu.core_type<tc>} {
    %c0 = arith.constant 0 : index
    %c0_0 = arith.constant 0 : index
    %0 = vector.load %arg0[%c0, %c0_0] : memref<64x256xbf16, #tpu.memory_space<vmem>>, vector<64x256xbf16>
    %c0_1 = arith.constant 0 : index
    %c0_2 = arith.constant 0 : index
    %1 = vector.load %arg3[%c0_1, %c0_2] : memref<4x256xf32, #tpu.memory_space<vmem>>, vector<1x256xf32>
    %c1 = arith.constant 1 : index
    %c0_3 = arith.constant 0 : index
    %2 = vector.load %arg3[%c1, %c0_3] : memref<4x256xf32, #tpu.memory_space<vmem>>, vector<1x128xf32>
    %c2 = arith.constant 2 : index
    %c0_4 = arith.constant 0 : index
    %3 = vector.load %arg3[%c2, %c0_4] : memref<4x256xf32, #tpu.memory_space<vmem>>, vector<1x6xf32>
    %c3 = arith.constant 3 : index
    %c0_5 = arith.constant 0 : index
    %4 = vector.load %arg3[%c3, %c0_5] : memref<4x256xf32, #tpu.memory_space<vmem>>, vector<1x128xf32>
    %c0_6 = arith.constant 0 : index
    %c0_7 = arith.constant 0 : index
    %5 = vector.load %arg1[%c0_6, %c0_7] : memref<256x256xbf16, #tpu.memory_space<vmem>>, vector<256x256xbf16>
    %cst = arith.constant dense<0.000000e+00> : vector<64x256xf32>
    %6 = tpu.matmul %0, %5, %cst {dimension_numbers = #tpu.dot_dimension_numbers<[1], [0], [0], [1], [0, 0, 1, 1], [], []>} : vector<64x256xbf16>, vector<256x256xbf16>, vector<64x256xf32> -> vector<64x256xf32>
    %7 = vector.broadcast %1 : vector<1x256xf32> to vector<64x256xf32>
    %8 = arith.addf %6, %7 : vector<64x256xf32>
    %9 = vector.extract_strided_slice %8 {offsets = [0, 0], sizes = [64, 128], strides = [1, 1]} : vector<64x256xf32> to vector<64x128xf32>
    %10 = math.tanh %9 : vector<64x128xf32>
    %11 = vector.extract_strided_slice %8 {offsets = [0, 128], sizes = [64, 128], strides = [1, 1]} : vector<64x256xf32> to vector<64x128xf32>
    %12 = arith.negf %11 : vector<64x128xf32>
    %13 = math.exp %12 : vector<64x128xf32>
    %cst_8 = arith.constant 1.000000e+00 : f32
    %14 = vector.broadcast %cst_8 : f32 to vector<64x128xf32>
    %15 = arith.addf %14, %13 : vector<64x128xf32>
    %16 = arith.divf %14, %15 : vector<64x128xf32>
    %17 = arith.mulf %10, %16 : vector<64x128xf32>
    %cst_9 = arith.constant dense<0.000000e+00> : vector<1x64xf32>
    %18 = tpu.matmul %2, %17, %cst_9 {dimension_numbers = #tpu.dot_dimension_numbers<[1], [1], [0], [0], [0, 0, 1, 0], [], []>} : vector<1x128xf32>, vector<64x128xf32>, vector<1x64xf32> -> vector<1x64xf32>
    %cst_10 = arith.constant dense<0xFF800000> : vector<1xf32>
    %19 = vector.multi_reduction <maximumf>, %18, %cst_10 [1] : vector<1x64xf32> to vector<1xf32>
    %20 = vector.shape_cast %19 : vector<1xf32> to vector<1x1xf32>
    %21 = vector.broadcast %20 : vector<1x1xf32> to vector<1x64xf32>
    %22 = arith.subf %18, %21 : vector<1x64xf32>
    %23 = math.exp %22 : vector<1x64xf32>
    %cst_11 = arith.constant dense<0.000000e+00> : vector<1xf32>
    %24 = vector.multi_reduction <add>, %23, %cst_11 [1] : vector<1x64xf32> to vector<1xf32>
    %25 = vector.shape_cast %24 : vector<1xf32> to vector<1x1xf32>
    %26 = tpu.reciprocal %25 {approx = true} : vector<1x1xf32> -> vector<1x1xf32>
    %27 = vector.broadcast %26 : vector<1x1xf32> to vector<1x64xf32>
    %28 = arith.mulf %23, %27 : vector<1x64xf32>
    %c0_12 = arith.constant 0 : index
    %c0_13 = arith.constant 0 : index
    %29 = vector.load %arg2[%c0_12, %c0_13] : memref<256x128xbf16, #tpu.memory_space<vmem>>, vector<256x128xbf16>
    %cst_14 = arith.constant dense<0.000000e+00> : vector<64x128xf32>
    %30 = tpu.matmul %0, %29, %cst_14 {dimension_numbers = #tpu.dot_dimension_numbers<[1], [0], [0], [1], [0, 0, 1, 1], [], []>} : vector<64x256xbf16>, vector<256x128xbf16>, vector<64x128xf32> -> vector<64x128xf32>
    %31 = vector.broadcast %4 : vector<1x128xf32> to vector<64x128xf32>
    %32 = arith.addf %30, %31 : vector<64x128xf32>
    %c0_15 = arith.constant 0 : index
    %c0_16 = arith.constant 0 : index
    %33 = vector.load %arg5[%c0_15, %c0_16] : memref<64x128xf32, #tpu.memory_space<vmem>>, vector<64x128xf32>
    tpu.vector_store %arg5[%c0_15, %c0_16], %32 {strides = array<i32>} : memref<64x128xf32, #tpu.memory_space<vmem>>, vector<64x128xf32>,
    %cst_17 = arith.constant dense<0.000000e+00> : vector<1x128xf32>
    %34 = tpu.matmul %28, %30, %cst_17 {dimension_numbers = #tpu.dot_dimension_numbers<[1], [0], [0], [1], [0, 0, 1, 1], [], []>} : vector<1x64xf32>, vector<64x128xf32>, vector<1x128xf32> -> vector<1x128xf32>
    %35 = vector.extract_strided_slice %34 {offsets = [0, 12], sizes = [1, 6], strides = [1, 1]} : vector<1x128xf32> to vector<1x6xf32>
    %36 = arith.addf %35, %3 : vector<1x6xf32>
    %cst_18 = arith.constant dense<0xFF800000> : vector<1xf32>
    %37 = vector.multi_reduction <maximumf>, %36, %cst_18 [1] : vector<1x6xf32> to vector<1xf32>
    %38 = vector.shape_cast %37 : vector<1xf32> to vector<1x1xf32>
    %39 = vector.broadcast %38 : vector<1x1xf32> to vector<1x6xf32>
    %40 = arith.subf %36, %39 : vector<1x6xf32>
    %41 = math.exp %40 : vector<1x6xf32>
    %cst_19 = arith.constant dense<0.000000e+00> : vector<1xf32>
    %42 = vector.multi_reduction <add>, %41, %cst_19 [1] : vector<1x6xf32> to vector<1xf32>
    %43 = vector.shape_cast %42 : vector<1xf32> to vector<1x1xf32>
    %44 = tpu.reciprocal %43 {approx = true} : vector<1x1xf32> -> vector<1x1xf32>
    %45 = vector.broadcast %44 : vector<1x1xf32> to vector<1x6xf32>
    %46 = arith.mulf %41, %45 : vector<1x6xf32>
    %cst_20 = arith.constant 0.000000e+00 : f32
    %47 = vector.broadcast %cst_20 : f32 to vector<1x52xf32>
    %48 = tpu.concatenate %28, %36, %46, %47 in 1 : vector<1x64xf32>, vector<1x6xf32>, vector<1x6xf32>, vector<1x52xf32> -> vector<1x128xf32>
    %c0_21 = arith.constant 0 : index
    %c0_22 = arith.constant 0 : index
    %49 = vector.load %arg4[%c0_21, %c0_22] : memref<1x128xf32, #tpu.memory_space<vmem>>, vector<1x128xf32>
    tpu.vector_store %arg4[%c0_21, %c0_22], %48 {strides = array<i32>} : memref<1x128xf32, #tpu.memory_space<vmem>>, vector<1x128xf32>,
    return
  }
}

</mosaic_0001>

<bundles_post_ra>
// kernel: gated_attention_forward.1
= control target key start
LH: loop header
LB: loop body
LE: loop exit
PB: predicated region body
PF: predicated region fallthrough
CT: control target
= control target key end

     0   :  { %v1155_v40 = vmov 0.0|0.0   ;;  %vm1156_vm0 = vmmov 0   ;;  %v1157_v41 = vmov 0.0   ;;  %v65_v42 = vlaneseq  ;;  %s1158_s23 = smov 12   ;;  %s1453_s1 = inlined_call_operand.vmem [shape: bf16[256,256], index: 1, kind: input, shape index: {}]   ;;  %s1454_s0 = inlined_call_operand.vmem [shape: bf16[64,256], index: 0, kind: input, shape index: {}]   ;;  %s1455_s3 = inlined_call_operand.vmem [shape: f32[4,256], index: 3, kind: input, shape index: {}]   ;;  %s1456_s2 = inlined_call_operand.vmem [shape: bf16[256,128], index: 2, kind: input, shape index: {}]   ;;  %s1457_s5 = inlined_call_operand.vmem [shape: f32[64,128], index: 5, kind: output, shape index: {1}]   ;;  %s1458_s4 = inlined_call_operand.vmem [shape: f32[1,128], index: 4, kind: output, shape index: {0}]  }
   0x1   :  { %v1023_v0 = vld [vmem:[%s1453_s1 + $0x4] ss:$8 sps:$4 sm:$0xff]   ;;  %v1025_v1 = vld [vmem:[%s1453_s1] ss:$8 sps:$4 sm:$0xff]   ;;  %v1026_v2 = vld [vmem:[%s1453_s1 + $0x14] ss:$8 sps:$4 sm:$0xff]   ;;  %992 = vmatprep.subr.bf16.mxu1 %v1155_v40  ;;  %970 = vmatprep.mubr.msk.f32.mxu1 %vm1156_vm0, %v1157_v41 }
   0x2   :  { %275 = vmatprep.subr.bf16.mxu0 %v1023_v0  ;;  %v1028_v3 = vld [vmem:[%s1453_s1 + $0x10] ss:$8 sps:$4 sm:$0xff]   ;;  %v1029_v4 = vld [vmem:[%s1453_s1 + $0x24] ss:$8 sps:$4 sm:$0xff]   ;;  %v1031_v5 = vld [vmem:[%s1453_s1 + $0x20] ss:$8 sps:$4 sm:$0xff]  }
   0x3   :  { %276 = vmatpush1.bf16.msra.mxu0 %v1025_v1  ;;  %v1032_v6 = vld [vmem:[%s1453_s1 + $0x34] ss:$8 sps:$4 sm:$0xff]   ;;  %v1034_v7 = vld [vmem:[%s1453_s1 + $0x30] ss:$8 sps:$4 sm:$0xff]   ;;  %v1035_v8 = vld [vmem:[%s1453_s1 + $0x44] ss:$8 sps:$4 sm:$0xff]  }
   0x4   :  { %277 = vmatprep.subr.bf16.mxu0 %v1026_v2  ;;  %v1037_v9 = vld [vmem:[%s1453_s1 + $0x40] ss:$8 sps:$4 sm:$0xff]   ;;  %v1038_v10 = vld [vmem:[%s1453_s1 + $0x54] ss:$8 sps:$4 sm:$0xff]   ;;  %v1040_v11 = vld [vmem:[%s1453_s1 + $0x50] ss:$8 sps:$4 sm:$0xff]  }
   0x5   :  { %v1041_v12 = vld [vmem:[%s1453_s1 + $0x64] ss:$8 sps:$4 sm:$0xff]   ;;  %v1043_v14 = vld [vmem:[%s1453_s1 + $0x60] ss:$8 sps:$4 sm:$0xff]   ;;  %v1044_v15 = vld [vmem:[%s1453_s1 + $0x74] ss:$8 sps:$4 sm:$0xff]  }
   0x6   :  { %v1234_v13 = vld [vmem:[%s1454_s0 + $0x4] ss:$8 sps:$4 sm:$0xff]   ;;  %v1046_v16 = vld [vmem:[%s1453_s1 + $0x70] ss:$8 sps:$4 sm:$0xff]   ;;  %v1049_v18 = vld [vmem:[%s1453_s1 + $0x80] ss:$8 sps:$4 sm:$0xff]  }
   0x7   :  { %278 = vmatpush1.bf16.msra.mxu0 %v1028_v3  ;;  %307 = vmatprep.mubr.bf16.mxu0 %v1234_v13  ;;  %v1047_v17 = vld [vmem:[%s1453_s1 + $0x84] ss:$8 sps:$4 sm:$0xff]   ;;  %v1050_v19 = vld [vmem:[%s1453_s1 + $0x94] ss:$8 sps:$4 sm:$0xff]   ;;  %v1052_v20 = vld [vmem:[%s1453_s1 + $0x90] ss:$8 sps:$4 sm:$0xff]  }
   0x8   :  { %279 = vmatprep.subr.bf16.mxu0 %v1029_v4  ;;  %v1053_v21 = vld [vmem:[%s1453_s1 + $0xa4] ss:$8 sps:$4 sm:$0xff]   ;;  %v1055_v22 = vld [vmem:[%s1453_s1 + $0xa0] ss:$8 sps:$4 sm:$0xff]   ;;  %v1056_v23 = vld [vmem:[%s1453_s1 + $0xb4] ss:$8 sps:$4 sm:$0xff]  }
   0x9   :  { %v1058_v24 = vld [vmem:[%s1453_s1 + $0xb0] ss:$8 sps:$4 sm:$0xff]   ;;  %v1059_v25 = vld [vmem:[%s1453_s1 + $0xc4] ss:$8 sps:$4 sm:$0xff]   ;;  %v1061_v26 = vld [vmem:[%s1453_s1 + $0xc0] ss:$8 sps:$4 sm:$0xff]  }
   0xa   :  { %v1062_v27 = vld [vmem:[%s1453_s1 + $0xd4] ss:$8 sps:$4 sm:$0xff]   ;;  %v1064_v28 = vld [vmem:[%s1453_s1 + $0xd0] ss:$8 sps:$4 sm:$0xff]   ;;  %v1065_v29 = vld [vmem:[%s1453_s1 + $0xe4] ss:$8 sps:$4 sm:$0xff]  }
   0xb   :  { %280 = vmatpush1.bf16.msra.mxu0 %v1031_v5  ;;  %v1067_v30 = vld [vmem:[%s1453_s1 + $0xe0] ss:$8 sps:$4 sm:$0xff]   ;;  %v1068_v31 = vld [vmem:[%s1453_s1 + $0xf4] ss:$8 sps:$4 sm:$0xff]   ;;  %v1070_v32 = vld [vmem:[%s1453_s1 + $0xf0] ss:$8 sps:$4 sm:$0xff]  }
   0xc   :  { %281 = vmatprep.subr.bf16.mxu0 %v1032_v6  ;;  %v1297_v33 = vld [vmem:[%s1454_s0] ss:$8 sps:$4 sm:$0xff]   ;;  %v1302_v34 = vld [vmem:[%s1454_s0 + $0x14] ss:$8 sps:$4 sm:$0xff]   ;;  %v1309_v35 = vld [vmem:[%s1454_s0 + $0x10] ss:$8 sps:$4 sm:$0xff]  }
   0xd   :  { %v1314_v36 = vld [vmem:[%s1454_s0 + $0x24] ss:$8 sps:$4 sm:$0xff]   ;;  %v1321_v37 = vld [vmem:[%s1454_s0 + $0x20] ss:$8 sps:$4 sm:$0xff]   ;;  %v1326_v38 = vld [vmem:[%s1454_s0 + $0x34] ss:$8 sps:$4 sm:$0xff]  }
   0xe   :  { %v1333_v39 = vld [vmem:[%s1454_s0 + $0x30] ss:$8 sps:$4 sm:$0xff]   ;;  %v66_v43 = vshrl.u32 %v65_v42, 7  ;;  %v28_v45 = vld [vmem:[%s1455_s3] ss:$4 sm:$0x3] }
   0xf   :  { %282 = vmatpush1.bf16.msra.mxu0 %v1034_v7  ;;  %vm482_vm1 = vcmask 516096   ;;  %vm707_vm2 = vcmask 523264   ;;  %vm790_vm3 = vcmask 139360   ;;  %vm801_vm4 = vcmask 40960   ;;  %s1161_s0 = smov 58  }
  0x10   :  { %283 = vmatprep.subr.bf16.mxu0 %v1035_v8  ;;  %v71_v44 = vsub.s32 1, %v66_v43  ;;  %v67_v54 = vsub.s32 0, %v66_v43  ;;  %vm816_vm5 = vcmask 572416   ;;  %vm818_vm6 = vcmask 621568  }
  0x12   :  { %v72_v46 = vrot.slane %v28_v45, %v71_v44  ;;  %v1341_v58 = vrot.slane %v28_v45, %v67_v54 }
  0x13   :  { %284 = vmatpush1.bf16.msra.mxu0 %v1037_v9 }
  0x14   :  { %285 = vmatprep.subr.bf16.mxu0 %v1038_v10 }
  0x17   :  { %286 = vmatpush1.bf16.msra.mxu0 %v1040_v11 }
  0x18   :  { %287 = vmatprep.subr.bf16.mxu0 %v1041_v12 }
  0x1b   :  { %288 = vmatpush1.bf16.msra.mxu0 %v1043_v14 }
  0x1c   :  { %289 = vmatprep.subr.bf16.mxu0 %v1044_v15 }
  0x1f   :  { %290 = vmatpush1.bf16.msra.mxu0 %v1046_v16 }
  0x20   :  { %291 = vmatprep.subr.bf16.mxu0 %v1047_v17 }
  0x23   :  { %292 = vmatpush1.bf16.msra.mxu0 %v1049_v18 }
  0x24   :  { %293 = vmatprep.subr.bf16.mxu0 %v1050_v19 }
  0x27   :  { %294 = vmatpush1.bf16.msra.mxu0 %v1052_v20 }
  0x28   :  { %295 = vmatprep.subr.bf16.mxu0 %v1053_v21 }
  0x2b   :  { %296 = vmatpush1.bf16.msra.mxu0 %v1055_v22 }
  0x2c   :  { %297 = vmatprep.subr.bf16.mxu0 %v1056_v23 }
  0x2f   :  { %298 = vmatpush1.bf16.msra.mxu0 %v1058_v24 }
  0x30   :  { %299 = vmatprep.subr.bf16.mxu0 %v1059_v25 }
  0x33   :  { %300 = vmatpush1.bf16.msra.mxu0 %v1061_v26 }
  0x34   :  { %301 = vmatprep.subr.bf16.mxu0 %v1062_v27 }
  0x37   :  { %302 = vmatpush1.bf16.msra.mxu0 %v1064_v28 }
  0x38   :  { %303 = vmatprep.subr.bf16.mxu0 %v1065_v29 }
  0x3b   :  { %304 = vmatpush1.bf16.msra.mxu0 %v1067_v30 }
  0x3c   :  { %305 = vmatprep.subr.bf16.mxu0 %v1068_v31 }
  0x3f   :  { %306 = vmatpush1.bf16.msra.mxu0 %v1070_v32 }
  0x40   :  { %1004 = vmatprep.subr.bf16.mxu0 %v1155_v40 }
  0x42   :  { %308 = vmatmul.mubr.bf16.vlgmr.msra.gmra.mrb[0].mxu0 %v1297_v33 }
  0x43   :  { %317 = vmatprep.mubr.bf16.mxu0 %v1302_v34 }
  0x4a   :  { %318 = vmatmul.mubr.bf16.gmra.mrb[4].mxu0 %v1309_v35 }
  0x4b   :  { %327 = vmatprep.mubr.bf16.mxu0 %v1314_v36 }
  0x52   :  { %328 = vmatmul.mubr.bf16.gmra.mrb[8].mxu0 %v1321_v37 }
  0x53   :  { %337 = vmatprep.mubr.bf16.mxu0 %v1326_v38 }
  0x5a   :  { %338 = vmatmul.mubr.bf16.gmra.mrb[12].mxu0 %v1333_v39 }
  0x5b   :  { %989 = vmatprep.mubr.msk.f32.mxu0 %vm1156_vm0, %v1157_v41 }
 0x115   :  { %v309_v47 = vpop.f32.mrb[0].mxu0 }
 0x116   :  { %v311_v48 = vpop.f32.mrb[1].mxu0  ;;  %v310_v0 = vadd.f32 %v309_v47, %v1341_v58 }
 0x117   :  { %v312_v49 = vadd.f32 %v311_v48, %v72_v46  ;;  %v313_v50 = vpop.f32.mrb[2].mxu0 }
 0x118   :  { %v315_v51 = vpop.f32.mrb[3].mxu0  ;;  %v314_v3 = vadd.f32 %v313_v50, %v1341_v58 }
 0x119   :  { %v869_v52 = vmul.f32 -1.442695, %v312_v49  ;;  %v316_v53 = vadd.f32 %v315_v51, %v72_v46 }
 0x11b   :  { %1099 = vpow2.f32 %v869_v52  ;;  %v870_v55 = vmul.f32 -1.442695, %v316_v53 }
 0x11d   :  { %1101 = vpow2.f32 %v870_v55  ;;  %v319_v56 = vpop.f32.mrb[4].mxu0 }
 0x11e   :  { %v321_v57 = vpop.f32.mrb[5].mxu0  ;;  %v320_v15 = vadd.f32 %v319_v56, %v1341_v58 }
 0x11f   :  { %v322_v59 = vadd.f32 %v321_v57, %v72_v46  ;;  %v323_v60 = vpop.f32.mrb[6].mxu0 }
 0x120   :  { %v325_v61 = vpop.f32.mrb[7].mxu0  ;;  %v324_v18 = vadd.f32 %v323_v60, %v1341_v58 }
 0x121   :  { %v871_v62 = vmul.f32 -1.442695, %v322_v59  ;;  %v326_v63 = vadd.f32 %v325_v61, %v72_v46 }
 0x123   :  { %1103 = vpow2.f32 %v871_v62  ;;  %v872_v1 = vmul.f32 -1.442695, %v326_v63 }
 0x125   :  { %v1100_v2 = vpop.eup %1099  ;;  %1105 = vpow2.f32 %v872_v1  ;;  %v329_v4 = vpop.f32.mrb[8].mxu0 }
 0x126   :  { %v380_v5 = vadd.f32 1.0, %v1100_v2  ;;  %v331_v6 = vpop.f32.mrb[9].mxu0  ;;  %1107 = vtanh.f32 %v310_v0  ;;  %v330_v32 = vadd.f32 %v329_v4, %v1341_v58 }
 0x127   :  { %v1102_v7 = vpop.eup %1101  ;;  %v332_v8 = vadd.f32 %v331_v6, %v72_v46  ;;  %v333_v9 = vpop.f32.mrb[10].mxu0 }
 0x128   :  { %1109 = vrcp.f32 %v380_v5  ;;  %v381_v10 = vadd.f32 1.0, %v1102_v7  ;;  %v335_v11 = vpop.f32.mrb[11].mxu0  ;;  %v334_v45 = vadd.f32 %v333_v9, %v1341_v58 }
 0x129   :  { %1111 = vtanh.f32 %v314_v3  ;;  %v873_v12 = vmul.f32 -1.442695, %v332_v8  ;;  %v336_v14 = vadd.f32 %v335_v11, %v72_v46 }
 0x12a   :  { %1113 = vrcp.f32 %v381_v10 }
 0x12b   :  { %1115 = vpow2.f32 %v873_v12  ;;  %v874_v16 = vmul.f32 -1.442695, %v336_v14 }
 0x12d   :  { %v1104_v17 = vpop.eup %1103  ;;  %1117 = vpow2.f32 %v874_v16  ;;  %v339_v19 = vpop.f32.mrb[12].mxu0  ;;  %v1083_v16 = vld [vmem:[%s1456_s2 + $0x40] sm:$0xff]  }
 0x12e   :  { %v382_v20 = vadd.f32 1.0, %v1104_v17  ;;  %v341_v21 = vpop.f32.mrb[13].mxu0  ;;  %1119 = vtanh.f32 %v320_v15  ;;  %v340_v54 = vadd.f32 %v339_v19, %v1341_v58  ;;  %v29_v15 = vld [vmem:[%s1455_s3 + $0x1] sm:$0x1]  ;;  %v1086_v19 = vld [vmem:[%s1456_s2 + $0x8] sm:$0xff]  }
 0x12f   :  { %v1106_v22 = vpop.eup %1105  ;;  %v342_v23 = vadd.f32 %v341_v21, %v72_v46  ;;  %v343_v24 = vpop.f32.mrb[14].mxu0  ;;  %v1084_v17 = vld [vmem:[%s1456_s2] sm:$0xff]   ;;  %v1089_v21 = vld [vmem:[%s1456_s2 + $0x58] sm:$0xff]  }
 0x130   :  { %1121 = vrcp.f32 %v382_v20  ;;  %v383_v25 = vadd.f32 1.0, %v1106_v22  ;;  %v345_v26 = vpop.f32.mrb[15].mxu0  ;;  %v1108_v27 = vpop.eup %1107  ;;  %v344_v59 = vadd.f32 %v343_v24, %v1341_v58  ;;  %v1088_v20 = vld [vmem:[%s1456_s2 + $0x10] sm:$0xff]   ;;  %v1090_v22 = vld [vmem:[%s1456_s2 + $0x18] sm:$0xff]   ;;  %v1092_v24 = vld [vmem:[%s1456_s2 + $0x20] sm:$0xff]  }
 0x131   :  { %1123 = vtanh.f32 %v324_v18  ;;  %v875_v28 = vmul.f32 -1.442695, %v342_v23  ;;  %v346_v29 = vadd.f32 %v345_v26, %v72_v46  ;;  %v1085_v18 = vld [vmem:[%s1456_s2 + $0x48] sm:$0xff]   ;;  %v1091_v23 = vld [vmem:[%s1456_s2 + $0x60] sm:$0xff]  }
 0x132   :  { %v1110_v30 = vpop.eup %1109  ;;  %1125 = vrcp.f32 %v383_v25  ;;  %v1093_v25 = vld [vmem:[%s1456_s2 + $0x68] sm:$0xff]  }
 0x133   :  { %v1112_v31 = vpop.eup %1111  ;;  %1127 = vpow2.f32 %v875_v28  ;;  %v876_v41 = vmul.f32 -1.442695, %v346_v29  ;;  %v404_v42 = vmul.f32 %v1110_v30, %v1108_v27  ;;  %v1094_v26 = vld [vmem:[%s1456_s2 + $0x28] sm:$0xff]   ;;  %v1095_v27 = vld [vmem:[%s1456_s2 + $0x70] sm:$0xff]   ;;  %v1097_v29 = vld [vmem:[%s1456_s2 + $0x78] sm:$0xff]  }
 0x134   :  { %v1114_v43 = vpop.eup %1113  ;;  %v1096_v28 = vld [vmem:[%s1456_s2 + $0x30] sm:$0xff]   ;;  %v1098_v30 = vld [vmem:[%s1456_s2 + $0x38] sm:$0xff]  }
 0x135   :  { %v1116_v44 = vpop.eup %1115  ;;  %1129 = vpow2.f32 %v876_v41  ;;  %v405_v47 = vmul.f32 %v1114_v43, %v1112_v31 }
 0x136   :  { %v384_v48 = vadd.f32 1.0, %v1116_v44  ;;  %1131 = vtanh.f32 %v330_v32 }
 0x137   :  { %v1118_v49 = vpop.eup %1117  ;;  %v993_v50 = vpack.c.bf16 %v405_v47, %v404_v42 }
 0x138   :  { %1133 = vrcp.f32 %v384_v48  ;;  %v385_v46 = vadd.f32 1.0, %v1118_v49  ;;  %v1120_v51 = vpop.eup %1119 }
 0x139   :  { %1135 = vtanh.f32 %v334_v45  ;;  %994 = vmatpush3.bf16.xpose.msra.mxu1 %v993_v50 }
 0x13a   :  { %v1122_v52 = vpop.eup %1121  ;;  %1137 = vrcp.f32 %v385_v46  ;;  %995 = vmatprep.subr.bf16.mxu1 %v1155_v40 }
 0x13b   :  { %v1124_v53 = vpop.eup %1123  ;;  %v406_v55 = vmul.f32 %v1122_v52, %v1120_v51  ;;  %1139 = vtanh.f32 %v340_v54 }
 0x13c   :  { %v1126_v56 = vpop.eup %1125 }
 0x13d   :  { %v1128_v57 = vpop.eup %1127  ;;  %v407_v60 = vmul.f32 %v1126_v56, %v1124_v53 }
 0x13e   :  { %v386_v61 = vadd.f32 1.0, %v1128_v57 }
 0x13f   :  { %v1130_v62 = vpop.eup %1129  ;;  %v996_v63 = vpack.c.bf16 %v407_v60, %v406_v55 }
 0x140   :  { %1141 = vrcp.f32 %v386_v61  ;;  %v387_v0 = vadd.f32 1.0, %v1130_v62  ;;  %v1132_v1 = vpop.eup %1131 }
 0x141   :  { %1143 = vtanh.f32 %v344_v59  ;;  %997 = vmatpush3.bf16.xpose.msra.mxu1 %v996_v63 }
 0x142   :  { %v1134_v2 = vpop.eup %1133  ;;  %1145 = vrcp.f32 %v387_v0  ;;  %998 = vmatprep.subr.bf16.mxu1 %v1155_v40 }
 0x143   :  { %v1136_v3 = vpop.eup %1135  ;;  %v408_v4 = vmul.f32 %v1134_v2, %v1132_v1 }
 0x144   :  { %v1138_v5 = vpop.eup %1137 }
 0x145   :  { %v409_v6 = vmul.f32 %v1138_v5, %v1136_v3  ;;  %v1140_v58 = vpop.eup %1139 }
 0x147   :  { %v999_v7 = vpack.c.bf16 %v409_v6, %v408_v4 }
 0x149   :  { %1000 = vmatpush3.bf16.xpose.msra.mxu1 %v999_v7 }
 0x14a   :  { %v1142_v8 = vpop.eup %1141  ;;  %1001 = vmatprep.subr.bf16.mxu1 %v1155_v40 }
 0x14b   :  { %v1144_v9 = vpop.eup %1143  ;;  %v410_v10 = vmul.f32 %v1142_v8, %v1140_v58 }
 0x14c   :  { %v1146_v11 = vpop.eup %1145 }
 0x14d   :  { %v411_v12 = vmul.f32 %v1146_v11, %v1144_v9 }
 0x14f   :  { %v1002_v14 = vpack.c.bf16 %v411_v12, %v410_v10  ;;  %v895_v12 = vld [vmem:[%s1455_s3 + $0x2] ss:$0 sm:$0xff] }
 0x150   :  { %786 = vrot.lane.b32.xlu1 %v895_v12, %s1158_s23 }
 0x151   :  { %1003 = vmatpush3.bf16.xpose.msra.mxu1 %v1002_v14 }
 0x152   :  { %905 = vmatprep.subr.bf16.mxu1 %v1083_v16 }
 0x158   :  { %971 = vmatmul.mubr.f32.vlgmr.msra.gmra.mrb[0].mxu1 %v29_v15 }
 0x159   :  { %654 = vmatprep.mubr.bf16.mxu1 %v1234_v13  ;;  %906 = vmatpush3.bf16.msra.mxu1 %v1084_v17  ;;  %v1087_v13 = vld [vmem:[%s1456_s2 + $0x50] sm:$0xff]  }
 0x15a   :  { %907 = vmatprep.subr.bf16.mxu1 %v1085_v18 }
 0x15d   :  { %908 = vmatpush3.bf16.msra.mxu1 %v1086_v19 }
 0x15e   :  { %909 = vmatprep.subr.bf16.mxu1 %v1087_v13 }
 0x161   :  { %910 = vmatpush3.bf16.msra.mxu1 %v1088_v20 }
 0x162   :  { %911 = vmatprep.subr.bf16.mxu1 %v1089_v21 }
 0x165   :  { %912 = vmatpush3.bf16.msra.mxu1 %v1090_v22 }
 0x166   :  { %913 = vmatprep.subr.bf16.mxu1 %v1091_v23 }
 0x169   :  { %914 = vmatpush3.bf16.msra.mxu1 %v1092_v24 }
 0x16a   :  { %915 = vmatprep.subr.bf16.mxu1 %v1093_v25 }
 0x16d   :  { %916 = vmatpush3.bf16.msra.mxu1 %v1094_v26 }
 0x16e   :  { %917 = vmatprep.subr.bf16.mxu1 %v1095_v27 }
 0x171   :  { %918 = vmatpush3.bf16.msra.mxu1 %v1096_v28 }
 0x172   :  { %919 = vmatprep.subr.bf16.mxu1 %v1097_v29 }
 0x175   :  { %920 = vmatpush3.bf16.msra.mxu1 %v1098_v30 }
 0x178   :  { %655 = vmatmul.mubr.bf16.vlgmr.msra.gmra.mrb[4].mxu1 %v1297_v33  ;;  %v893_v33 = vld [vmem:[%s1455_s3 + $0x3] ss:$0 sm:$0xff]  ;;  %s1160_s3 = smov 116  }
 0x179   :  { %662 = vmatprep.mubr.bf16.mxu1 %v1302_v34 }
 0x180   :  { %663 = vmatmul.mubr.bf16.gmra.mrb[8].mxu1 %v1309_v35 }
 0x181   :  { %670 = vmatprep.mubr.bf16.mxu1 %v1314_v36 }
 0x188   :  { %671 = vmatmul.mubr.bf16.gmra.mrb[12].mxu1 %v1321_v37 }
 0x189   :  { %678 = vmatprep.mubr.bf16.mxu1 %v1326_v38 }
 0x190   :  { %679 = vmatmul.mubr.bf16.gmra.mrb[16].mxu1 %v1333_v39 }
 0x1c2   :  { %v787_v17 = vpop.permute.xlu1 %786 }
 0x22b   :  { %v478_v31 = vpop.f32.mrb[0].mxu1 }
 0x22c   :  { %v972_v32 = vpop.f32.mrb[1].mxu1  ;;  %v483_v41 = vsel %vm482_vm1, %v478_v31, -inf }
 0x22d   :  { %484 = vmax.xlane.f32.xlu0 %v483_v41 }
 0x24b   :  { %v921_v42 = vpop.f32.mrb[4].mxu1 }
 0x24c   :  { %v922_v34 = vpop.f32.mrb[5].mxu1 }
 0x24d   :  { %v923_v35 = vadd.f32 %v922_v34, %v921_v42  ;;  %v924_v36 = vpop.f32.mrb[6].mxu1 }
 0x24e   :  { %v925_v43 = vpop.f32.mrb[7].mxu1 }
 0x24f   :  { %v691_v37 = vadd.f32 %v923_v35, %v893_v33  ;;  %v926_v44 = vadd.f32 %v925_v43, %v924_v36 }
 0x251   :  { %699 = vst [vmem:[%s1457_s5] sm:$0xff] %v691_v37  ;;  %v692_v38 = vadd.f32 %v926_v44, %v893_v33  ;;  %v1005_v39 = vpack.c.bf16 %v926_v44, %v923_v35 }
 0x253   :  { %700 = vst [vmem:[%s1457_s5 + $0x8] sm:$0xff] %v692_v38  ;;  %v927_v45 = vpop.f32.mrb[8].mxu1  ;;  %1006 = vmatpush3.bf16.msra.mxu0 %v1005_v39 }
 0x254   :  { %v928_v47 = vpop.f32.mrb[9].mxu1  ;;  %1007 = vmatprep.subr.bf16.mxu0 %v1155_v40 }
 0x255   :  { %v929_v48 = vadd.f32 %v928_v47, %v927_v45  ;;  %v930_v49 = vpop.f32.mrb[10].mxu1 }
 0x256   :  { %v931_v50 = vpop.f32.mrb[11].mxu1 }
 0x257   :  { %v693_v46 = vadd.f32 %v929_v48, %v893_v33  ;;  %v932_v51 = vadd.f32 %v931_v50, %v930_v49 }
 0x259   :  { %701 = vst [vmem:[%s1457_s5 + $0x10] sm:$0xff] %v693_v46  ;;  %v694_v52 = vadd.f32 %v932_v51, %v893_v33  ;;  %v1008_v53 = vpack.c.bf16 %v932_v51, %v929_v48 }
 0x25b   :  { %702 = vst [vmem:[%s1457_s5 + $0x18] sm:$0xff] %v694_v52  ;;  %v933_v54 = vpop.f32.mrb[12].mxu1  ;;  %1009 = vmatpush3.bf16.msra.mxu0 %v1008_v53 }
 0x25c   :  { %v934_v55 = vpop.f32.mrb[13].mxu1  ;;  %1010 = vmatprep.subr.bf16.mxu0 %v1155_v40 }
 0x25d   :  { %v935_v56 = vadd.f32 %v934_v55, %v933_v54  ;;  %v936_v57 = vpop.f32.mrb[14].mxu1 }
 0x25e   :  { %v937_v59 = vpop.f32.mrb[15].mxu1 }
 0x25f   :  { %v695_v60 = vadd.f32 %v935_v56, %v893_v33  ;;  %v938_v61 = vadd.f32 %v937_v59, %v936_v57 }
 0x261   :  { %703 = vst [vmem:[%s1457_s5 + $0x20] sm:$0xff] %v695_v60  ;;  %v696_v62 = vadd.f32 %v938_v61, %v893_v33  ;;  %v1011_v63 = vpack.c.bf16 %v938_v61, %v935_v56 }
 0x263   :  { %704 = vst [vmem:[%s1457_s5 + $0x28] sm:$0xff] %v696_v62  ;;  %v939_v2 = vpop.f32.mrb[16].mxu1  ;;  %1012 = vmatpush3.bf16.msra.mxu0 %v1011_v63 }
 0x264   :  { %v940_v3 = vpop.f32.mrb[17].mxu1  ;;  %1013 = vmatprep.subr.bf16.mxu0 %v1155_v40 }
 0x265   :  { %v941_v5 = vadd.f32 %v940_v3, %v939_v2  ;;  %v942_v6 = vpop.f32.mrb[18].mxu1 }
 0x266   :  { %v943_v7 = vpop.f32.mrb[19].mxu1 }
 0x267   :  { %v697_v58 = vadd.f32 %v941_v5, %v893_v33  ;;  %v944_v8 = vadd.f32 %v943_v7, %v942_v6 }
 0x269   :  { %705 = vst [vmem:[%s1457_s5 + $0x30] sm:$0xff] %v697_v58  ;;  %v698_v9 = vadd.f32 %v944_v8, %v893_v33  ;;  %v1014_v10 = vpack.c.bf16 %v944_v8, %v941_v5 }
 0x26b   :  { %706 = vst [vmem:[%s1457_s5 + $0x38] sm:$0xff] %v698_v9  ;;  %1015 = vmatpush3.bf16.msra.mxu0 %v1014_v10  ;;  %s1159_s5 = smov 52  }
 0x2ba   :  { %v485_v0 = vpop.xlane.xlu0 %484 }
 0x2bb   :  { %v486_v1 = vsub.f32 %v478_v31, %v485_v0 }
 0x2bd   :  { %v487_v4 = vmul.f32 1.442695, %v486_v1 }
 0x2bf   :  { %1147 = vpow2.f32 %v487_v4 }
 0x2c9   :  { %v1148_v11 = vpop.eup %1147 }
 0x2ca   :  { %v489_v40 = vsel %vm482_vm1, %v1148_v11, 0.0 }
 0x2cb   :  { %490 = vadd.xlane.f32.xlu0 %v489_v40 }
 0x358   :  { %v491_v14 = vpop.xlane.xlu0 %490 }
 0x359   :  { %1149 = vrcp.f32 %v491_v14 }
 0x363   :  { %v1150_v15 = vpop.eup %1149 }
 0x364   :  { %v493_v16 = vmul.f32 %v1150_v15, %v1148_v11 }
 0x366   :  { %990 = vmatmul.mubr.msk.f32.vlgmr.msra.gmra.mrb[16].mxu0 %vm707_vm2, %v493_v16 }
 0x439   :  { %v777_v18 = vpop.f32.mrb[16].mxu0 }
 0x43a   :  { %v789_v19 = vadd.f32 %v787_v17, %v777_v18  ;;  %v991_v13 = vpop.f32.mrb[17].mxu0 }
 0x43c   :  { %v791_v20 = vsel %vm790_vm3, %v789_v19, -inf }
 0x43d   :  { %792 = vmax.xlane.f32.xlu1 %v791_v20 }
 0x44e   :  { %808 = vrot.lane.b32.xlu1 %v789_v19, %s1159_s5 }
 0x4ca   :  { %v793_v21 = vpop.xlane.xlu1 %792 }
 0x4cb   :  { %v794_v22 = vsub.f32 %v789_v19, %v793_v21 }
 0x4cd   :  { %v795_v23 = vmul.f32 1.442695, %v794_v22 }
 0x4ce   :  { %v809_v30 = vpop.permute.xlu1 %808 }
 0x4cf   :  { %1151 = vpow2.f32 %v795_v23  ;;  %v815_v31 = vsel %vm707_vm2, %v493_v16, %v809_v30 }
 0x4d9   :  { %v1152_v24 = vpop.eup %1151 }
 0x4da   :  { %798 = vrot.lane.b32.xlu0 %v1152_v24, %s1160_s3 }
 0x54c   :  { %v799_v25 = vpop.permute.xlu0 %798 }
 0x54d   :  { %v802_v26 = vsel %vm801_vm4, %v799_v25, 0.0 }
 0x54e   :  { %803 = vadd.xlane.f32.xlu0 %v802_v26 }
 0x5db   :  { %v804_v27 = vpop.xlane.xlu0 %803 }
 0x5dc   :  { %1153 = vrcp.f32 %v804_v27 }
 0x5e6   :  { %v1154_v28 = vpop.eup %1153 }
 0x5e7   :  { %v806_v29 = vmul.f32 %v1154_v28, %v1152_v24 }
 0x5e9   :  { %812 = vrot.lane.b32.xlu1 %v806_v29, %s1161_s0 }
 0x65b   :  { %v813_v32 = vpop.permute.xlu1 %812 }
 0x65c   :  { %v817_v41 = vsel %vm816_vm5, %v815_v31, %v813_v32 }
 0x65d   :  { %v819_v42 = vsel %vm818_vm6, %v817_v41, 0.0 }
 0x65e   :  { %820 = vst [vmem:[%s1458_s4] sm:$0x1] %v819_v42 }

</bundles_post_ra>
